<compile_context>
chip_gen: v7x
topology: tpu7x:2x2x1
jax: 0.10.0
libtpu: 0.0.40
codegen_flags: <defaults>
</compile_context>

<pallas_src>
import numpy as np
import jax
import jax.numpy as jnp
from jax.experimental import pallas as pl
from jax.experimental.pallas import tpu as pltpu

BINS = (1, 3, 6, 8)


# ----------------------------- host-side glue -------------------------------
def _round_up(a, b):
    return ((a + b - 1) // b) * b


def _adaptive_pool_matrix(out_size, in_size):
    """Row i averages input range [floor(i*L/o), ceil((i+1)*L/o)) (PyTorch rule)."""
    m = np.zeros((out_size, in_size), dtype=np.float32)
    for i in range(out_size):
        s = (i * in_size) // out_size
        e = ((i + 1) * in_size + out_size - 1) // out_size
        m[i, s:e] = 1.0 / (e - s)
    return m


def _bilinear_matrix(out_size, in_size):
    """1-D bilinear interpolation weights, align_corners=True."""
    m = np.zeros((out_size, in_size), dtype=np.float32)
    if in_size == 1:
        m[:, 0] = 1.0
        return m
    for o in range(out_size):
        src = o * (in_size - 1) / (out_size - 1) if out_size > 1 else 0.0
        i0 = int(np.floor(src))
        i1 = min(i0 + 1, in_size - 1)
        f = src - i0
        m[o, i0] += 1.0 - f
        m[o, i1] += f
    return m


# ------------------------------- Pallas wrapper ------------------------------
def ppm_v2_pallas(x, weights, bins=BINS, *, out_dtype=jnp.bfloat16):
    N, C, H, W = x.shape
    nb = len(bins)
    assert C % nb == 0, "in_dim must be divisible by len(bins)"
    R = C // nb
    HW = H * W

    n_cells = sum(b * b for b in bins)                    # 110 for (1,3,6,8)
    BT = _round_up(n_cells, 128)                          # lane-dense pooled axis
    offs = np.cumsum([0] + [b * b for b in bins])

    # HW tile: lane-dense multiple of 128, >=512 when HW allows (amortizes the
    # ~0.35us per-grid-step overhead and gives unmasked vst stores).
    TILE = min(512, _round_up(HW, 128))
    HWp = _round_up(HW, TILE)
    T = HWp // TILE

    # Host-precomputed pooling / upsample operators (Kronecker-factored),
    # concatenated over bins; zero rows/cols in the padded HW region.
    p_all = np.zeros((HWp, BT), dtype=np.float32)         # pooled = x_flat @ P
    u_all = np.zeros((BT, HWp), dtype=np.float32)         # up     = y @ U
    for bi, bn in enumerate(bins):
        pr = _adaptive_pool_matrix(bn, H)                  # (bn, H)
        pc = _adaptive_pool_matrix(bn, W)                  # (bn, W)
        ur = _bilinear_matrix(H, bn)                       # (H, bn)
        uc = _bilinear_matrix(W, bn)                       # (W, bn)
        lo, hi = int(offs[bi]), int(offs[bi + 1])
        p_all[:HW, lo:hi] = np.kron(pr, pc).T
        u_all[lo:hi, :HW] = np.kron(ur, uc).T

    x_flat = jnp.asarray(x).reshape(N, C, HW).astype(jnp.bfloat16)
    if HWp != HW:
        x_flat = jnp.pad(x_flat, ((0, 0), (0, 0), (0, HWp - HW)))
    w_all = jnp.concatenate([jnp.asarray(w, jnp.float32) for w in weights],
                            axis=0).astype(jnp.bfloat16)   # (C, C) stacked 1x1 convs
    p_all = jnp.asarray(p_all, jnp.bfloat16)
    u_all = jnp.asarray(u_all, jnp.bfloat16)

    def kernel(x_ref, w_ref, p_ref, u_ref, o_ref, y_ref):
        t = pl.program_id(1)

        # Phase (a): once per batch element -> pooled cells of all bins, the
        # stacked 1x1 convs + ReLU, bin-ownership mask.  Result persists in
        # the VMEM scratch across all HW tiles of this batch element.
        @pl.when(t == 0)
        def _():
            xb = x_ref[0]                                            # (C, HWp) bf16
            pooled = jnp.dot(xb, p_ref[...],
                             preferred_element_type=jnp.float32)     # (C, BT)
            y = jnp.dot(w_ref[...], pooled.astype(jnp.bfloat16),
                        preferred_element_type=jnp.float32)          # (C, BT)
            y = jnp.maximum(y, 0.0)
            # In-kernel bin mask (no DMA'd mask operand): output row c belongs
            # to bin c//R, pooled column j to the bin with offs[b]<=j<offs[b+1].
            row = jax.lax.broadcasted_iota(jnp.int32, y.shape, 0)
            col = jax.lax.broadcasted_iota(jnp.int32, y.shape, 1)
            row_bin = jnp.zeros(y.shape, jnp.int32)
            col_bin = jnp.zeros(y.shape, jnp.int32)
            for b in range(1, nb):                                   # static unroll
                row_bin += (row >= b * R).astype(jnp.int32)
                col_bin += (col >= int(offs[b])).astype(jnp.int32)
            y_ref[...] = jnp.where(row_bin == col_bin, y, 0.0).astype(jnp.bfloat16)

        # Phase (b): per HW tile -> concatenated bilinear upsample of every
        # branch (one matmul) + residual sliced from the resident x block.
        start = pl.multiple_of(t * TILE, 128)
        x_tile = x_ref[0, :, pl.ds(start, TILE)].astype(jnp.float32)  # (C, TILE)
        up = jnp.dot(y_ref[...], u_ref[...],
                     preferred_element_type=jnp.float32)              # (C, TILE)
        o_ref[0] = (x_tile + up).astype(o_ref.dtype)

    def run(single_buffer_invariants):
        inv = {"pipeline_mode": pl.Buffered(1)} if single_buffer_invariants else {}
        in_specs = [
            # x: one batch element, resident across all HW tiles (one HBM read).
            pl.BlockSpec((1, C, HWp), lambda n, t: (n, 0, 0)),
            # Grid-invariant operands (constant index maps).
            pl.BlockSpec((C, C), lambda n, t: (0, 0), **inv),
            pl.BlockSpec((HWp, BT), lambda n, t: (0, 0), **inv),
            # Upsample operator, tiled along HW.
            pl.BlockSpec((BT, TILE), lambda n, t: (0, t)),
        ]
        out_specs = pl.BlockSpec((1, C, TILE), lambda n, t: (n, 0, t))

        out_itemsize = jnp.dtype(out_dtype).itemsize
        footprint = (2 * C * HWp * 2                 # x block, double-buffered, bf16
                     + C * C * 2 + HWp * BT * 2      # W, P (single-buffered target)
                     + 2 * BT * TILE * 2             # U tile, double-buffered
                     + 2 * C * TILE * out_itemsize   # output tile, double-buffered
                     + C * BT * 2)                   # y scratch
        try:
            cap = pltpu.get_tpu_info().vmem_capacity_bytes
        except Exception:
            cap = 128 * 1024 * 1024
        vmem_limit = int(min(0.85 * cap, max(2 * footprint + (8 << 20), 32 << 20)))

        return pl.pallas_call(
            kernel,
            out_shape=jax.ShapeDtypeStruct((N, C, HWp), out_dtype),
            grid=(N, T),
            in_specs=in_specs,
            out_specs=out_specs,
            scratch_shapes=[pltpu.VMEM((C, BT), jnp.bfloat16)],
            compiler_params=pltpu.CompilerParams(
                # HW-tile axis carries the per-batch y scratch -> sequential
                # ("arbitrary"); batch axis is parallel (megacore sharding).
                dimension_semantics=("parallel", "arbitrary"),
                vmem_limit_bytes=vmem_limit),
        )(x_flat, w_all, p_all, u_all)

    try:
        out = jax.block_until_ready(run(True))
    except Exception:
        # TODO(synk): pl.Buffered(1) single-buffering rejected by this jax
        # build; fall back to default double buffering of the W/P operands.
        out = jax.block_until_ready(run(False))

    return out[:, :, :HW].reshape(N, C, H, W)


# ---------------------- independent numpy reference --------------------------
def ppm_v2_ref(x, weights, bins=BINS):
    x = np.asarray(x, dtype=np.float32)
    N, C, H, W = x.shape
    R = C // len(bins)
    outs = []
    for bi, bn in enumerate(bins):
        pooled = np.zeros((N, C, bn, bn), np.float32)
        for i in range(bn):
            hs = (i * H) // bn
            he = ((i + 1) * H + bn - 1) // bn
            for j in range(bn):
                ws = (j * W) // bn
                we = ((j + 1) * W + bn - 1) // bn
                pooled[:, :, i, j] = x[:, :, hs:he, ws:we].mean(axis=(2, 3))
        y = np.maximum(np.einsum('rc,ncij->nrij', np.asarray(weights[bi]), pooled), 0.0)
        up = np.zeros((N, R, H, W), np.float32)
        for oh in range(H):
            sh = oh * (bn - 1) / (H - 1) if bn > 1 else 0.0
            h0 = int(np.floor(sh)); h1 = min(h0 + 1, bn - 1); fh = sh - h0
            for ow in range(W):
                sw = ow * (bn - 1) / (W - 1) if bn > 1 else 0.0
                w0 = int(np.floor(sw)); w1 = min(w0 + 1, bn - 1); fw = sw - w0
                up[:, :, oh, ow] = ((1 - fh) * (1 - fw) * y[:, :, h0, w0]
                                    + (1 - fh) * fw * y[:, :, h0, w1]
                                    + fh * (1 - fw) * y[:, :, h1, w0]
                                    + fh * fw * y[:, :, h1, w1])
        outs.append(up)
    return x + np.concatenate(outs, axis=1)


if __name__ == "__main__":
    N, C, H, W = 2, 8, 16, 16               # in_dim=8 -> reduction_dim=2
    R = C // len(BINS)

    key = jax.random.PRNGKey(0)
    kx, *kws = jax.random.split(key, 1 + len(BINS))
    x = jax.random.normal(kx, (N, C, H, W), dtype=jnp.float32)
    weights = [0.2 * jax.random.normal(k, (R, C), dtype=jnp.float32) for k in kws]

    out = jax.block_until_ready(ppm_v2_pallas(x, weights))

    ref = ppm_v2_ref(np.asarray(x), [np.asarray(w) for w in weights])
    # bf16 x/P/U/output (f32 accumulation + f32 residual add) -> loose tolerance.
    np.testing.assert_allclose(np.asarray(out, dtype=np.float32), ref,
                               rtol=3e-2, atol=3e-2)
    print("KERNEL_OK")
</pallas_src>

<mosaic_0001>
module attributes {stable_mosaic.version = 11 : i64} {
  func.func @kernel(%arg0: i32, %arg1: i32, %arg2: memref<1x8x256xbf16, #tpu.memory_space<vmem>>, %arg3: memref<8x8xbf16, #tpu.memory_space<vmem>>, %arg4: memref<256x128xbf16, #tpu.memory_space<vmem>>, %arg5: memref<128x256xbf16, #tpu.memory_space<vmem>>, %arg6: memref<1x8x256xbf16, #tpu.memory_space<vmem>>, %arg7: memref<8x128xbf16, #tpu.memory_space<vmem>>) attributes {dimension_semantics = [#tpu.dimension_semantics<parallel>, #tpu.dimension_semantics<arbitrary>], iteration_bounds = array<i64: 2, 1>, scalar_prefetch = 0 : i64, scratch_operands = 1 : i64, tpu.core_type = #tpu.core_type<tc>, window_params = [{transform_indices = @transform_0, window_bounds = array<i64: 1, 8, 256>}, {pipeline_mode = #tpu.pipeline_mode<synchronous>, transform_indices = @transform_1, window_bounds = array<i64: 8, 8>}, {pipeline_mode = #tpu.pipeline_mode<synchronous>, transform_indices = @transform_2, window_bounds = array<i64: 256, 128>}, {transform_indices = @transform_3, window_bounds = array<i64: 128, 256>}, {transform_indices = @transform_4, window_bounds = array<i64: 1, 8, 256>}]} {
    %c0_i32 = arith.constant 0 : i32
    %0 = arith.cmpi eq, %arg1, %c0_i32 : i32
    %1 = arith.extui %0 : i1 to i32
    %c0_i32_0 = arith.constant 0 : i32
    %2 = arith.cmpi ne, %1, %c0_i32_0 : i32
    scf.if %2 {
      %c0_9 = arith.constant 0 : index
      %c0_10 = arith.constant 0 : index
      %c0_11 = arith.constant 0 : index
      %17 = vector.load %arg2[%c0_9, %c0_10, %c0_11] : memref<1x8x256xbf16, #tpu.memory_space<vmem>>, vector<1x8x256xbf16>
      %18 = vector.shape_cast %17 : vector<1x8x256xbf16> to vector<8x256xbf16>
      %c0_12 = arith.constant 0 : index
      %c0_13 = arith.constant 0 : index
      %19 = vector.load %arg4[%c0_12, %c0_13] : memref<256x128xbf16, #tpu.memory_space<vmem>>, vector<256x128xbf16>
      %cst_14 = arith.constant dense<0.000000e+00> : vector<8x128xf32>
      %20 = tpu.matmul %18, %19, %cst_14 {dimension_numbers = #tpu.dot_dimension_numbers<[1], [0], [0], [1], [0, 0, 1, 1], [], []>} : vector<8x256xbf16>, vector<256x128xbf16>, vector<8x128xf32> -> vector<8x128xf32>
      %c0_15 = arith.constant 0 : index
      %c0_16 = arith.constant 0 : index
      %21 = vector.load %arg3[%c0_15, %c0_16] : memref<8x8xbf16, #tpu.memory_space<vmem>>, vector<8x8xbf16>
      %22 = arith.truncf %20 : vector<8x128xf32> to vector<8x128xbf16>
      %cst_17 = arith.constant dense<0.000000e+00> : vector<8x128xf32>
      %23 = tpu.matmul %21, %22, %cst_17 {dimension_numbers = #tpu.dot_dimension_numbers<[1], [0], [0], [1], [0, 0, 1, 1], [], []>} : vector<8x8xbf16>, vector<8x128xbf16>, vector<8x128xf32> -> vector<8x128xf32>
      %cst_18 = arith.constant 0.000000e+00 : f32
      %24 = vector.broadcast %cst_18 : f32 to vector<8x128xf32>
      %25 = arith.maximumf %23, %24 : vector<8x128xf32>
      %26 = tpu.iota {dimensions = array<i32: 0>} : vector<8x128xi32>
      %27 = tpu.iota {dimensions = array<i32: 1>} : vector<8x128xi32>
      %c0_i32_19 = arith.constant 0 : i32
      %28 = vector.broadcast %c0_i32_19 : i32 to vector<8x128xi32>
      %c0_i32_20 = arith.constant 0 : i32
      %29 = vector.broadcast %c0_i32_20 : i32 to vector<8x128xi32>
      %c2_i32 = arith.constant 2 : i32
      %30 = vector.broadcast %c2_i32 : i32 to vector<8x128xi32>
      %31 = arith.cmpi sge, %26, %30 : vector<8x128xi32>
      %32 = arith.extui %31 : vector<8x128xi1> to vector<8x128xi32>
      %33 = arith.addi %28, %32 : vector<8x128xi32>
      %c1_i32 = arith.constant 1 : i32
      %34 = vector.broadcast %c1_i32 : i32 to vector<8x128xi32>
      %35 = arith.cmpi sge, %27, %34 : vector<8x128xi32>
      %36 = arith.extui %35 : vector<8x128xi1> to vector<8x128xi32>
      %37 = arith.addi %29, %36 : vector<8x128xi32>
      %c4_i32 = arith.constant 4 : i32
      %38 = vector.broadcast %c4_i32 : i32 to vector<8x128xi32>
      %39 = arith.cmpi sge, %26, %38 : vector<8x128xi32>
      %40 = arith.extui %39 : vector<8x128xi1> to vector<8x128xi32>
      %41 = arith.addi %33, %40 : vector<8x128xi32>
      %c10_i32 = arith.constant 10 : i32
      %42 = vector.broadcast %c10_i32 : i32 to vector<8x128xi32>
      %43 = arith.cmpi sge, %27, %42 : vector<8x128xi32>
      %44 = arith.extui %43 : vector<8x128xi1> to vector<8x128xi32>
      %45 = arith.addi %37, %44 : vector<8x128xi32>
      %c6_i32 = arith.constant 6 : i32
      %46 = vector.broadcast %c6_i32 : i32 to vector<8x128xi32>
      %47 = arith.cmpi sge, %26, %46 : vector<8x128xi32>
      %48 = arith.extui %47 : vector<8x128xi1> to vector<8x128xi32>
      %49 = arith.addi %41, %48 : vector<8x128xi32>
      %c46_i32 = arith.constant 46 : i32
      %50 = vector.broadcast %c46_i32 : i32 to vector<8x128xi32>
      %51 = arith.cmpi sge, %27, %50 : vector<8x128xi32>
      %52 = arith.extui %51 : vector<8x128xi1> to vector<8x128xi32>
      %53 = arith.addi %45, %52 : vector<8x128xi32>
      %54 = arith.cmpi eq, %49, %53 : vector<8x128xi32>
      %cst_21 = arith.constant 0.000000e+00 : f32
      %55 = vector.broadcast %cst_21 : f32 to vector<8x128xf32>
      %56 = arith.select %54, %25, %55 : vector<8x128xi1>, vector<8x128xf32>
      %57 = arith.truncf %56 : vector<8x128xf32> to vector<8x128xbf16>
      %c0_22 = arith.constant 0 : index
      %c0_23 = arith.constant 0 : index
      %58 = vector.load %arg7[%c0_22, %c0_23] : memref<8x128xbf16, #tpu.memory_space<vmem>>, vector<8x128xbf16>
      tpu.vector_store %arg7[%c0_22, %c0_23], %57 {strides = array<i32>} : memref<8x128xbf16, #tpu.memory_space<vmem>>, vector<8x128xbf16>,
    } else {
    }
    %c256_i32 = arith.constant 256 : i32
    %3 = arith.muli %arg1, %c256_i32 : i32
    %4 = tpu.assume_multiple %3, 128 : i32
    %c0 = arith.constant 0 : index
    %c0_1 = arith.constant 0 : index
    %5 = arith.index_cast %4 : i32 to index
    %6 = vector.load %arg2[%c0, %c0_1, %5] : memref<1x8x256xbf16, #tpu.memory_space<vmem>>, vector<1x8x256xbf16>
    %7 = vector.shape_cast %6 : vector<1x8x256xbf16> to vector<8x256xbf16>
    %8 = arith.extf %7 : vector<8x256xbf16> to vector<8x256xf32>
    %c0_2 = arith.constant 0 : index
    %c0_3 = arith.constant 0 : index
    %9 = vector.load %arg7[%c0_2, %c0_3] : memref<8x128xbf16, #tpu.memory_space<vmem>>, vector<8x128xbf16>
    %c0_4 = arith.constant 0 : index
    %c0_5 = arith.constant 0 : index
    %10 = vector.load %arg5[%c0_4, %c0_5] : memref<128x256xbf16, #tpu.memory_space<vmem>>, vector<128x256xbf16>
    %cst = arith.constant dense<0.000000e+00> : vector<8x256xf32>
    %11 = tpu.matmul %9, %10, %cst {dimension_numbers = #tpu.dot_dimension_numbers<[1], [0], [0], [1], [0, 0, 1, 1], [], []>} : vector<8x128xbf16>, vector<128x256xbf16>, vector<8x256xf32> -> vector<8x256xf32>
    %12 = arith.addf %8, %11 : vector<8x256xf32>
    %13 = arith.truncf %12 : vector<8x256xf32> to vector<8x256xbf16>
    %c0_6 = arith.constant 0 : index
    %c0_7 = arith.constant 0 : index
    %c0_8 = arith.constant 0 : index
    %14 = vector.load %arg6[%c0_6, %c0_7, %c0_8] : memref<1x8x256xbf16, #tpu.memory_space<vmem>>, vector<1x8x256xbf16>
    %15 = vector.shape_cast %14 : vector<1x8x256xbf16> to vector<8x256xbf16>
    %16 = vector.shape_cast %13 : vector<8x256xbf16> to vector<1x8x256xbf16>
    tpu.vector_store %arg6[%c0_6, %c0_7, %c0_8], %16 {strides = array<i32>} : memref<1x8x256xbf16, #tpu.memory_space<vmem>>, vector<1x8x256xbf16>,
    return
  }
  func.func @transform_0(%arg0: i32, %arg1: i32) -> (i32, i32, i32) {
    %c0_i32 = arith.constant 0 : i32
    %c0_i32_0 = arith.constant 0 : i32
    %c0_i32_1 = arith.constant 0 : i32
    return %arg0, %c0_i32, %c0_i32_0 : i32, i32, i32
  }
  func.func @transform_1(%arg0: i32, %arg1: i32) -> (i32, i32) {
    %c0_i32 = arith.constant 0 : i32
    %c0_i32_0 = arith.constant 0 : i32
    %c0_i32_1 = arith.constant 0 : i32
    return %c0_i32, %c0_i32_0 : i32, i32
  }
  func.func @transform_2(%arg0: i32, %arg1: i32) -> (i32, i32) {
    %c0_i32 = arith.constant 0 : i32
    %c0_i32_0 = arith.constant 0 : i32
    %c0_i32_1 = arith.constant 0 : i32
    return %c0_i32, %c0_i32_0 : i32, i32
  }
  func.func @transform_3(%arg0: i32, %arg1: i32) -> (i32, i32) {
    %c0_i32 = arith.constant 0 : i32
    %c0_i32_0 = arith.constant 0 : i32
    return %c0_i32, %arg1 : i32, i32
  }
  func.func @transform_4(%arg0: i32, %arg1: i32) -> (i32, i32, i32) {
    %c0_i32 = arith.constant 0 : i32
    %c0_i32_0 = arith.constant 0 : i32
    return %arg0, %c0_i32, %arg1 : i32, i32, i32
  }
}

module attributes {stable_mosaic.version = 11 : i64} {
  func.func @kernel(%arg0: i32, %arg1: i32, %arg2: memref<1x8x256xbf16, #tpu.memory_space<vmem>>, %arg3: memref<8x8xbf16, #tpu.memory_space<vmem>>, %arg4: memref<256x128xbf16, #tpu.memory_space<vmem>>, %arg5: memref<128x256xbf16, #tpu.memory_space<vmem>>, %arg6: memref<1x8x256xbf16, #tpu.memory_space<vmem>>, %arg7: memref<8x128xbf16, #tpu.memory_space<vmem>>) attributes {dimension_semantics = [#tpu.dimension_semantics<parallel>, #tpu.dimension_semantics<arbitrary>], iteration_bounds = array<i64: 2, 1>, scalar_prefetch = 0 : i64, scratch_operands = 1 : i64, tpu.core_type = #tpu.core_type<tc>, window_params = [{transform_indices = @transform_0, window_bounds = array<i64: 1, 8, 256>}, {pipeline_mode = #tpu.pipeline_mode<synchronous>, transform_indices = @transform_1, window_bounds = array<i64: 8, 8>}, {pipeline_mode = #tpu.pipeline_mode<synchronous>, transform_indices = @transform_2, window_bounds = array<i64: 256, 128>}, {transform_indices = @transform_3, window_bounds = array<i64: 128, 256>}, {transform_indices = @transform_4, window_bounds = array<i64: 1, 8, 256>}]} {
    %c0_i32 = arith.constant 0 : i32
    %0 = arith.cmpi eq, %arg1, %c0_i32 : i32
    %1 = arith.extui %0 : i1 to i32
    %c0_i32_0 = arith.constant 0 : i32
    %2 = arith.cmpi ne, %1, %c0_i32_0 : i32
    scf.if %2 {
      %c0_9 = arith.constant 0 : index
      %c0_10 = arith.constant 0 : index
      %c0_11 = arith.constant 0 : index
      %17 = vector.load %arg2[%c0_9, %c0_10, %c0_11] : memref<1x8x256xbf16, #tpu.memory_space<vmem>>, vector<1x8x256xbf16>
      %18 = vector.shape_cast %17 : vector<1x8x256xbf16> to vector<8x256xbf16>
      %c0_12 = arith.constant 0 : index
      %c0_13 = arith.constant 0 : index
      %19 = vector.load %arg4[%c0_12, %c0_13] : memref<256x128xbf16, #tpu.memory_space<vmem>>, vector<256x128xbf16>
      %cst_14 = arith.constant dense<0.000000e+00> : vector<8x128xf32>
      %20 = tpu.matmul %18, %19, %cst_14 {dimension_numbers = #tpu.dot_dimension_numbers<[1], [0], [0], [1], [0, 0, 1, 1], [], []>} : vector<8x256xbf16>, vector<256x128xbf16>, vector<8x128xf32> -> vector<8x128xf32>
      %c0_15 = arith.constant 0 : index
      %c0_16 = arith.constant 0 : index
      %21 = vector.load %arg3[%c0_15, %c0_16] : memref<8x8xbf16, #tpu.memory_space<vmem>>, vector<8x8xbf16>
      %22 = arith.truncf %20 : vector<8x128xf32> to vector<8x128xbf16>
      %cst_17 = arith.constant dense<0.000000e+00> : vector<8x128xf32>
      %23 = tpu.matmul %21, %22, %cst_17 {dimension_numbers = #tpu.dot_dimension_numbers<[1], [0], [0], [1], [0, 0, 1, 1], [], []>} : vector<8x8xbf16>, vector<8x128xbf16>, vector<8x128xf32> -> vector<8x128xf32>
      %cst_18 = arith.constant 0.000000e+00 : f32
      %24 = vector.broadcast %cst_18 : f32 to vector<8x128xf32>
      %25 = arith.maximumf %23, %24 : vector<8x128xf32>
      %26 = tpu.iota {dimensions = array<i32: 0>} : vector<8x128xi32>
      %27 = tpu.iota {dimensions = array<i32: 1>} : vector<8x128xi32>
      %c0_i32_19 = arith.constant 0 : i32
      %28 = vector.broadcast %c0_i32_19 : i32 to vector<8x128xi32>
      %c0_i32_20 = arith.constant 0 : i32
      %29 = vector.broadcast %c0_i32_20 : i32 to vector<8x128xi32>
      %c2_i32 = arith.constant 2 : i32
      %30 = vector.broadcast %c2_i32 : i32 to vector<8x128xi32>
      %31 = arith.cmpi sge, %26, %30 : vector<8x128xi32>
      %32 = arith.extui %31 : vector<8x128xi1> to vector<8x128xi32>
      %33 = arith.addi %28, %32 : vector<8x128xi32>
      %c1_i32 = arith.constant 1 : i32
      %34 = vector.broadcast %c1_i32 : i32 to vector<8x128xi32>
      %35 = arith.cmpi sge, %27, %34 : vector<8x128xi32>
      %36 = arith.extui %35 : vector<8x128xi1> to vector<8x128xi32>
      %37 = arith.addi %29, %36 : vector<8x128xi32>
      %c4_i32 = arith.constant 4 : i32
      %38 = vector.broadcast %c4_i32 : i32 to vector<8x128xi32>
      %39 = arith.cmpi sge, %26, %38 : vector<8x128xi32>
      %40 = arith.extui %39 : vector<8x128xi1> to vector<8x128xi32>
      %41 = arith.addi %33, %40 : vector<8x128xi32>
      %c10_i32 = arith.constant 10 : i32
      %42 = vector.broadcast %c10_i32 : i32 to vector<8x128xi32>
      %43 = arith.cmpi sge, %27, %42 : vector<8x128xi32>
      %44 = arith.extui %43 : vector<8x128xi1> to vector<8x128xi32>
      %45 = arith.addi %37, %44 : vector<8x128xi32>
      %c6_i32 = arith.constant 6 : i32
      %46 = vector.broadcast %c6_i32 : i32 to vector<8x128xi32>
      %47 = arith.cmpi sge, %26, %46 : vector<8x128xi32>
      %48 = arith.extui %47 : vector<8x128xi1> to vector<8x128xi32>
      %49 = arith.addi %41, %48 : vector<8x128xi32>
      %c46_i32 = arith.constant 46 : i32
      %50 = vector.broadcast %c46_i32 : i32 to vector<8x128xi32>
      %51 = arith.cmpi sge, %27, %50 : vector<8x128xi32>
      %52 = arith.extui %51 : vector<8x128xi1> to vector<8x128xi32>
      %53 = arith.addi %45, %52 : vector<8x128xi32>
      %54 = arith.cmpi eq, %49, %53 : vector<8x128xi32>
      %cst_21 = arith.constant 0.000000e+00 : f32
      %55 = vector.broadcast %cst_21 : f32 to vector<8x128xf32>
      %56 = arith.select %54, %25, %55 : vector<8x128xi1>, vector<8x128xf32>
      %57 = arith.truncf %56 : vector<8x128xf32> to vector<8x128xbf16>
      %c0_22 = arith.constant 0 : index
      %c0_23 = arith.constant 0 : index
      %58 = vector.load %arg7[%c0_22, %c0_23] : memref<8x128xbf16, #tpu.memory_space<vmem>>, vector<8x128xbf16>
      tpu.vector_store %arg7[%c0_22, %c0_23], %57 {strides = array<i32>} : memref<8x128xbf16, #tpu.memory_space<vmem>>, vector<8x128xbf16>,
    } else {
    }
    %c256_i32 = arith.constant 256 : i32
    %3 = arith.muli %arg1, %c256_i32 : i32
    %4 = tpu.assume_multiple %3, 128 : i32
    %c0 = arith.constant 0 : index
    %c0_1 = arith.constant 0 : index
    %5 = arith.index_cast %4 : i32 to index
    %6 = vector.load %arg2[%c0, %c0_1, %5] : memref<1x8x256xbf16, #tpu.memory_space<vmem>>, vector<1x8x256xbf16>
    %7 = vector.shape_cast %6 : vector<1x8x256xbf16> to vector<8x256xbf16>
    %8 = arith.extf %7 : vector<8x256xbf16> to vector<8x256xf32>
    %c0_2 = arith.constant 0 : index
    %c0_3 = arith.constant 0 : index
    %9 = vector.load %arg7[%c0_2, %c0_3] : memref<8x128xbf16, #tpu.memory_space<vmem>>, vector<8x128xbf16>
    %c0_4 = arith.constant 0 : index
    %c0_5 = arith.constant 0 : index
    %10 = vector.load %arg5[%c0_4, %c0_5] : memref<128x256xbf16, #tpu.memory_space<vmem>>, vector<128x256xbf16>
    %cst = arith.constant dense<0.000000e+00> : vector<8x256xf32>
    %11 = tpu.matmul %9, %10, %cst {dimension_numbers = #tpu.dot_dimension_numbers<[1], [0], [0], [1], [0, 0, 1, 1], [], []>} : vector<8x128xbf16>, vector<128x256xbf16>, vector<8x256xf32> -> vector<8x256xf32>
    %12 = arith.addf %8, %11 : vector<8x256xf32>
    %13 = arith.truncf %12 : vector<8x256xf32> to vector<8x256xbf16>
    %c0_6 = arith.constant 0 : index
    %c0_7 = arith.constant 0 : index
    %c0_8 = arith.constant 0 : index
    %14 = vector.load %arg6[%c0_6, %c0_7, %c0_8] : memref<1x8x256xbf16, #tpu.memory_space<vmem>>, vector<1x8x256xbf16>
    %15 = vector.shape_cast %14 : vector<1x8x256xbf16> to vector<8x256xbf16>
    %16 = vector.shape_cast %13 : vector<8x256xbf16> to vector<1x8x256xbf16>
    tpu.vector_store %arg6[%c0_6, %c0_7, %c0_8], %16 {strides = array<i32>} : memref<1x8x256xbf16, #tpu.memory_space<vmem>>, vector<1x8x256xbf16>,
    return
  }
  func.func @transform_0(%arg0: i32, %arg1: i32) -> (i32, i32, i32) {
    %c0_i32 = arith.constant 0 : i32
    %c0_i32_0 = arith.constant 0 : i32
    %c0_i32_1 = arith.constant 0 : i32
    return %arg0, %c0_i32, %c0_i32_0 : i32, i32, i32
  }
  func.func @transform_1(%arg0: i32, %arg1: i32) -> (i32, i32) {
    %c0_i32 = arith.constant 0 : i32
    %c0_i32_0 = arith.constant 0 : i32
    %c0_i32_1 = arith.constant 0 : i32
    return %c0_i32, %c0_i32_0 : i32, i32
  }
  func.func @transform_2(%arg0: i32, %arg1: i32) -> (i32, i32) {
    %c0_i32 = arith.constant 0 : i32
    %c0_i32_0 = arith.constant 0 : i32
    %c0_i32_1 = arith.constant 0 : i32
    return %c0_i32, %c0_i32_0 : i32, i32
  }
  func.func @transform_3(%arg0: i32, %arg1: i32) -> (i32, i32) {
    %c0_i32 = arith.constant 0 : i32
    %c0_i32_0 = arith.constant 0 : i32
    return %c0_i32, %arg1 : i32, i32
  }
  func.func @transform_4(%arg0: i32, %arg1: i32) -> (i32, i32, i32) {
    %c0_i32 = arith.constant 0 : i32
    %c0_i32_0 = arith.constant 0 : i32
    return %arg0, %c0_i32, %arg1 : i32, i32, i32
  }
}

</mosaic_0001>

<bundles_post_ra>
// kernel: tpu_custom_call.1
= control target key start
LH: loop header
LB: loop body
LE: loop exit
PB: predicated region body
PF: predicated region fallthrough
CT: control target
= control target key end

     0   :  { %9 = vsyncpa [#allocation4], 0  ;;  %s1579_s0 = inlined_call_operand.hbm [shape: bf16[2,8,256], index: 0, kind: input, shape index: {}]   ;;  %s1580_s1 = inlined_call_operand.hbm [shape: bf16[8,8], index: 1, kind: input, shape index: {}]   ;;  %s1581_s2 = inlined_call_operand.hbm [shape: bf16[256,128], index: 2, kind: input, shape index: {}]   ;;  %s1582_s3 = inlined_call_operand.hbm [shape: bf16[128,256], index: 3, kind: input, shape index: {}]   ;;  %s1583_s4 = inlined_call_operand.hbm [shape: bf16[2,8,256], index: 4, kind: output, shape index: {}]  }
   0x1   :  { %11 = vsyncpa [#allocation4 + $0x1], 0 }
   0x2   :  { %12 = vsyncpa [#allocation7], 0 }
   0x3   :  { %13 = vsyncpa [#allocation10], 0 }
   0x4   :  { %14 = vsyncpa [#allocation5], 0 }
   0x5   :  { %16 = vsyncpa [#allocation5 + $0x1], 0  ;;  %s1299_s15 = smov 0   ;;  %s1301_s16 = smov 0  }
   0x6   :  { %s1303_s17 = smov 0   ;;  %s1305_s18 = smov 0  }
   0x7   :  { %s1307_s19 = smov 0   ;;  %s1309_s20 = smov 0  }
   0x8 LB: > { %s824_s21 = sadd.s32 4294967295, %s1260_s20   ;;  %s825_s22 = sadd.s32 4294967294, %s1260_s20   ;;  %s1260_s20 = sphi %s1309_s20, %s22_s20   ;;  %s1256_s19 = sphi %s1307_s19, %s1607_s19   ;;  %s1252_s18 = sphi %s1305_s18, %s1606_s18   ;;  %s1248_s17 = sphi %s1303_s17, %s1605_s17   ;;  %s1244_s16 = sphi %s1301_s16, %s1604_s16   ;;  %s1240_s15 = sphi %s1299_s15, %s1603_s15  }
   0x9   : > { %p54_p0 = scmp.ne.s32.totalorder %s1244_s16, %s1240_s15  ;;  %p1333_p1 = scmp.eq.s32.totalorder %s824_s21, 0 }
   0xa   : > { %p1337_p2 = scmp.eq.s32.totalorder %s824_s21, 1  ;;  %p154_p3 = scmp.eq.s32.totalorder %s825_s22, 1 }
   0xb   : > { %s1588_s23 = scalar_select %p1333_p1, 1, 0 }
   0xc   : > { %s1589_s24 = scalar_select %p1337_p2, 1, 0 }
   0xd   : > { %p1343_p4 = por %p1333_p1, %p54_p0  ;;  %p826_p5 = scmp.ge.s32.totalorder %s1260_s20, 1 }
   0xe   : > { %p1348_p6 = por %p154_p3, %p54_p0  ;;  %p161_p7 = scmp.lt.s32.totalorder %s1260_s20, 3 }
   0xf   : > { %s1590_s25 = scalar_select %p1343_p4, 1, 0 }
  0x10   : > { %s1591_s26 = scalar_select %p1348_p6, 1, 0 }
  0x11   : > { %p1353_p8 = pnand %p826_p5, %p161_p7  ;;  %s1262_s28 = smov [#allocation6]  }
  0x12   : > { %s174_s29 = sshll.u32 %s1262_s28, 4  ;;  %s1263_s30 = smov [#allocation8]   ;;  %s175_s29 = int_to_ptr.vmem [resolvable:$true] %s174_s29 }
  0x13   : > { %s1592_s27 = scalar_select %p1353_p8, 1, 0 }
  0x14   : > { %p930_p10 = pneg %p1353_p8  ;;  %s184_s5 = sshll.u32 %s1263_s30, 4  ;;  %s1366_s5 = int_to_ptr.vmem [resolvable:$true] %s184_s5 }
  0x15   : > { %s1264_s7 = smov [#allocation9]   ;;  %s1056_s11 = scalar_lea.hbm %s1580_s1, 64 }
  0x16   : > { %p1362_p11 = pnand %p930_p10, %p1333_p1  ;;  %s1368_s8 = sshll.u32 %s1264_s7, 4  ;;  %s201_s8 = int_to_ptr.vmem [resolvable:$true] %s1368_s8 }
  0x17   : > { %p1057_p12 = scmp.ne.s32.totalorder %s1580_s1, %s1056_s11  ;;  %p1063_p5 = scmp.lt.u32.totalorder %s1056_s11, %s1580_s1 }
  0x18   : > { %p1378_p13 = pneg %p1362_p11 }
  0x1a   : > { %p1059_p0 = pnand %p1378_p13, %p1057_p12 }
  0x1c   : > { %p1060_p3 = pneg %p1059_p0 }
  0x1e   : > { %p1065_p7 = pnand %p1063_p5, %p1060_p3 }
  0x20   : > { %1068 = shalt.err (!%p1065_p7)
}
  0x21   : > { %s1069_s28 = scalar_lea.vmem %s175_s29, 64  ;;  %p1077_p1 = scmp.lt.s32.totalorder %s175_s29, %s175_s29 }
  0x22   : > { %p1070_p10 = scmp.ne.s32.totalorder %s175_s29, %s1069_s28  ;;  %p1078_p4 = scmp.lt.s32.totalorder %s1069_s28, %s1069_s28 }
  0x24   : > { %p1072_p9 = pnand %p1070_p10, %p1378_p13  ;;  %p1079_p8 = por %p1078_p4, %p1077_p1 }
  0x26   : > { %p1073_p6 = pneg %p1072_p9 }
  0x28   : > { %p1080_p2 = pnand %p1079_p8, %p1073_p6 }
  0x2a   : > { %1083 = shalt.err (!%p1080_p2)
}
  0x2b   : > { %933 = dma.hbm_to_vmem [thread:$0]  (!%p1362_p11), %s1580_s1, 64, %s175_s29, [#allocation7]  }
  0x2c   : > { %s1084_s11 = scalar_lea.hbm %s1581_s2, 2048 }
  0x2d   : > { %p1085_p9 = scmp.ne.s32.totalorder %s1581_s2, %s1084_s11  ;;  %p1091_p2 = scmp.lt.u32.totalorder %s1084_s11, %s1581_s2 }
  0x2f   : > { %p1087_p12 = pnand %p1085_p9, %p1378_p13 }
  0x31   : > { %p1088_p1 = pneg %p1087_p12 }
  0x33   : > { %p1093_p4 = pnand %p1091_p2, %p1088_p1 }
  0x35   : > { %1096 = shalt.err (!%p1093_p4)
}
  0x36   : > { %s1097_s29 = scalar_lea.vmem %s1366_s5, 2048  ;;  %p1105_p3 = scmp.lt.s32.totalorder %s1366_s5, %s1366_s5 }
  0x37   : > { %p1098_p6 = scmp.ne.s32.totalorder %s1366_s5, %s1097_s29  ;;  %p1106_p5 = scmp.lt.s32.totalorder %s1097_s29, %s1097_s29 }
  0x39   : > { %p1100_p8 = pnand %p1098_p6, %p1378_p13  ;;  %p1107_p7 = por %p1106_p5, %p1105_p3 }
  0x3b   : > { %p1101_p0 = pneg %p1100_p8 }
  0x3d   : > { %p1108_p10 = pnand %p1107_p7, %p1101_p0 }
  0x3f   : > { %1111 = shalt.err (!%p1108_p10)
}
  0x40   : > { %s1265_s28 = smov 64   ;;  %s1266_s30 = smov 4  }
  0x41   : > { %936 = dma.hbm_to_vmem [thread:$0]  (!%p1362_p11), %s1581_s2, 2048, %s1366_s5, [#allocation7], %s1265_s28, %s1265_s28, %s1266_s30  }
  0x42   : > { %s1112_s12 = scalar_lea.hbm %s1582_s3, 2048 }
  0x43   : > { %p1113_p9 = scmp.ne.s32.totalorder %s1582_s3, %s1112_s12  ;;  %p1119_p2 = scmp.lt.u32.totalorder %s1112_s12, %s1582_s3 }
  0x45   : > { %p1115_p12 = pnand %p1113_p9, %p1378_p13 }
  0x47   : > { %p1116_p1 = pneg %p1115_p12 }
  0x49   : > { %p1121_p4 = pnand %p1119_p2, %p1116_p1 }
  0x4b   : > { %1124 = shalt.err (!%p1121_p4)
}
  0x4c   : > { %s1125_s7 = scalar_lea.vmem %s201_s8, 2048  ;;  %p1133_p3 = scmp.lt.s32.totalorder %s201_s8, %s201_s8 }
  0x4d   : > { %p1126_p6 = scmp.ne.s32.totalorder %s201_s8, %s1125_s7  ;;  %p1134_p5 = scmp.lt.s32.totalorder %s1125_s7, %s1125_s7 }
  0x4f   : > { %p1128_p8 = pnand %p1126_p6, %p1378_p13  ;;  %p1135_p7 = por %p1134_p5, %p1133_p3 }
  0x51   : > { %p1129_p0 = pneg %p1128_p8 }
  0x53   : > { %p1136_p10 = pnand %p1135_p7, %p1129_p0 }
  0x55   : > { %1139 = shalt.err (!%p1136_p10)
}
  0x56   : > { %s1267_s5 = smov 128   ;;  %s1268_s14 = smov 8  }
  0x57   : > { %939 = dma.hbm_to_vmem [thread:$0]  (!%p1362_p11), %s1582_s3, 2048, %s201_s8, [#allocation10], %s1267_s5, %s1267_s5, %s1268_s14  }
  0x58   : > { %s41_s9 = sadd.s32 1, %s1248_s17  ;;  %s34_s10 = sadd.s32 1, %s1256_s19 }
  0x59   : > { %p48_p13 = scmp.ne.s32.totalorder %s1248_s17, %s1244_s16  ;;  %p36_p9 = scmp.ge.s32.totalorder %s34_s10, 2 }
  0x5a   : > { %p49_p12 = scmp.eq.s32.totalorder %s1260_s20, 0  ;;  %p1595_p1 = scmp.ne.s32.totalorder %s1589_s24, 0 }
  0x5b   : > { %p951_p4 = scmp.lt.s32.totalorder %s1260_s20, 2  ;;  %s1609_s10 = smov (%p36_p9, %s34_s10), 0 }
  0x5c   : > { %p1443_p2 = por %p1595_p1, %p48_p13  ;;  %p50_p6 = por %p49_p12, %p48_p13 }
  0x5d   : > { %s214_s6 = sand.u32 1, %s1248_s17   ;;  %s38_s12 = ssub.s32 %s1256_s19, %s1609_s10 }
  0x5e   : > { %p39_p8 = scmp.eq.s32.totalorder %s38_s12, 0  ;;  %s831_s8 = sshll.u32 %s214_s6, 3 }
  0x5f   : > { %s881_s13 = sshll.u32 %s1256_s19, 7  ;;  %s218_s7 = scalar_lea.vmem [#allocation3], %s831_s8 }
  0x60   : > { %s1455_s21 = scalar_select %p39_p8, %s1248_s17, %s41_s9  }
  0x61   : > { %s1460_s24 = scalar_lea.hbm %s1579_s0, %s881_s13  ;;  %s226_s5 = sshll.u32 %s218_s7, 4  ;;  %s1462_s5 = int_to_ptr.vmem [resolvable:$true] %s226_s5 }
  0x62   : > { %p1466_p11 = pnand %p951_p4, %p50_p6  ;;  %s215_s28 = scalar_lea.sflag [#allocation4], %s214_s6 }
  0x63   : > { %s1140_s30 = scalar_lea.hbm %s1460_s24, 128  ;;  %s1145_s8 = scalar_lea.hbm %s1579_s0, 256 }
  0x64   : > { %p1141_p0 = scmp.ne.s32.totalorder %s1460_s24, %s1140_s30  ;;  %p1142_p3 = pneg %p1466_p11 }
  0x65   : > { %p1146_p10 = scmp.lt.u32.totalorder %s1460_s24, %s1579_s0  ;;  %p1147_p13 = scmp.lt.u32.totalorder %s1145_s8, %s1140_s30 }
  0x66   : > { %p1143_p5 = pnand %p1142_p3, %p1141_p0  ;;  %p1149_p12 = scmp.lt.u32.totalorder %s1140_s30, %s1460_s24 }
  0x67   : > { %p1148_p9 = por %p1147_p13, %p1146_p10 }
  0x68   : > { %p1144_p7 = pneg %p1143_p5 }
  0x69   : > { %p1150_p1 = por %p1149_p12, %p1148_p9 }
  0x6b   : > { %p1151_p4 = pnand %p1150_p1, %p1144_p7 }
  0x6d   : > { %1154 = shalt.err (!%p1151_p4)
}
  0x6e   : > { %s1155_s6 = scalar_lea.vmem %s1462_s5, 128  ;;  %s1269_s29 = smov [#allocation3]  }
  0x6f   : > { %p1156_p6 = scmp.ne.s32.totalorder %s1462_s5, %s1155_s6  ;;  %s1160_s7 = sshll.u32 %s1269_s29, 4  ;;  %s1161_s7 = int_to_ptr.vmem [resolvable:$false] %s1160_s7 }
  0x70   : > { %s1162_s9 = scalar_lea.vmem %s1161_s7, 256  ;;  %p1163_p5 = scmp.lt.s32.totalorder %s1462_s5, %s1161_s7 }
  0x71   : > { %p1158_p8 = pnand %p1156_p6, %p1142_p3  ;;  %p1164_p10 = scmp.lt.s32.totalorder %s1162_s9, %s1155_s6 }
  0x73   : > { %p1159_p0 = pneg %p1158_p8  ;;  %p1165_p13 = por %p1164_p10, %p1163_p5 }
  0x75   : > { %p1166_p9 = pnand %p1165_p13, %p1159_p0 }
  0x77   : > { %1169 = shalt.err (!%p1166_p9)
}
  0x78   : > { %943 = dma.hbm_to_vmem [thread:$0]  (!%p1466_p11), %s1460_s24, 128, %s1462_s5, %s215_s28  }
  0x79   : > { %p1598_p7 = scmp.ne.s32.totalorder %s1592_s27, 0 }
  0x7a   : > { %s1498_s30 = sand.u32 (!%p1598_p7), 1, %s1244_s16   ;;  %p1599_p3 = scmp.ne.s32.totalorder (!%p1598_p7), %s1590_s25, 0 }
  0x7b   : > { %235 = sbr.rel (%p1598_p7) target bundleno = 846 (0x34e), region = 36  ;;  %s835_s12 = sshll.u32 (!%p1598_p7), %s1498_s30, 3 }
  0x7c   : > { %s238_s8 = scalar_lea.sflag (!%p1598_p7), [#allocation4], %s1498_s30  ;;  %s241_s13 = scalar_lea.vmem (!%p1598_p7), [#allocation3], %s835_s12 }
  0x82   : > { %1223 = dma.done.wait (%p1599_p3), %s238_s8, 128  }
  0x83   : > { %1225 = vsyncadd (%p1599_p3), %s238_s8, 4294967168  ;;  %p1600_p11 = scmp.ne.s32.totalorder %s1588_s23, 0 }
  0x85   : > { %1227 = dma.done.wait (%p1600_p11), [#allocation7], 2112  }
  0x86   : > { %1229 = vsyncadd (%p1600_p11), [#allocation7], 4294965184 }
  0x87   : > { %1231 = dma.done.wait (%p1600_p11), [#allocation10], 2048  }
  0x88   : > { %1233 = vsyncadd (%p1600_p11), [#allocation10], 4294965248  ;;  %v1014_v0 = vld [vmem:[#allocation8 + $0x40] sm:$0xff]   ;;  %v1016_v2 = vld [vmem:[#allocation8 + $0x48] sm:$0xff]   ;;  %v1270_v19 = vmov 0.0   ;;  %vm1271_vm0 = vmmov 0   ;;  %v512_v45 = vlaneseq }
  0x89   : > { %v1015_v1 = vld [vmem:[#allocation8] sm:$0xff]   ;;  %884 = vmatprep.subr.bf16.mxu0 %v1014_v0  ;;  %v1017_v3 = vld [vmem:[#allocation8 + $0x8] sm:$0xff]   ;;  %v1018_v4 = vld [vmem:[#allocation8 + $0x50] sm:$0xff]   ;;  %908 = vmatprep.subr.bf16.mxu1 %v1270_v19  ;;  %vm467_vm1 = vcmask 1043456   ;;  %vm463_vm2 = vcmask 64512   ;;  %v1272_v38 = vmov 0  }
  0x8a   : > { %885 = vmatpush3.bf16.msra.mxu0 %v1015_v1  ;;  %v1019_v5 = vld [vmem:[#allocation8 + $0x10] sm:$0xff]   ;;  %v1020_v6 = vld [vmem:[#allocation8 + $0x58] sm:$0xff]   ;;  %v1022_v8 = vld [vmem:[#allocation8 + $0x60] sm:$0xff]   ;;  %910 = vmatprep.mubr.msk.bf16.mxu1 %vm1271_vm0, %v1270_v19  ;;  %v513_v46 = vshrl.u32 %v512_v45, 7  ;;  %v515_v47 = vand.u32 127, %v512_v45  ;;  %s883_s23 = sshll.u32 %s1252_s18, 7 }
  0x8b   : > { %886 = vmatprep.subr.bf16.mxu0 %v1016_v2  ;;  %v1021_v7 = vld [vmem:[#allocation8 + $0x18] sm:$0xff]   ;;  %v1023_v9 = vld [vmem:[#allocation8 + $0x20] sm:$0xff]   ;;  %v1024_v10 = vld [vmem:[#allocation8 + $0x68] sm:$0xff]   ;;  %s277_s25 = scalar_lea.vmem [#allocation11], %s835_s12  ;;  %s1530_s14 = scalar_lea.hbm %s1583_s4, %s883_s23 }
  0x8c   : > { %v1516_v11 = vld [vmem:[%s241_s13] sm:$0xff]  ;;  %v461_v28 = vld [vmem:[#allocation6] sm:$0xf]  ;;  %v1032_v29 = vld [vmem:[#allocation9] ss:$8 sps:$4 sm:$0xff]   ;;  %vm516_vm3 = vcmp.ge.s32.totalorder %v513_v46, 2 }
  0x8d   : > { %v1025_v12 = vld [vmem:[#allocation8 + $0x28] sm:$0xff]   ;;  %v841_v13 = vcombine.high %v1516_v11, %v1516_v11  ;;  %v1026_v14 = vld [vmem:[#allocation8 + $0x70] sm:$0xff]   ;;  %v1028_v16 = vld [vmem:[#allocation8 + $0x78] sm:$0xff]   ;;  %v840_v18 = vcombine.low %v1516_v11, %v1516_v11  ;;  %vm518_vm4 = vcmp.ge.s32.totalorder %v515_v47, 1  ;;  %vm520_vm5 = vcmp.ge.s32.totalorder %v513_v46, 4  ;;  %s710_s27 = sshll.u32 %s277_s25, 4  ;;  %s1532_s27 = int_to_ptr.vmem [resolvable:$true] %s710_s27 }
  0x8e   : > { %887 = vmatpush3.bf16.msra.mxu0 %v1017_v3  ;;  %v1027_v15 = vld [vmem:[#allocation8 + $0x30] sm:$0xff]   ;;  %v1029_v17 = vld [vmem:[#allocation8 + $0x38] sm:$0xff]   ;;  %v1034_v26 = vld [vmem:[#allocation9 + $0x4] ss:$8 sps:$4 sm:$0xff]   ;;  %vm523_vm6 = vcmp.ge.s32.totalorder %v515_v47, 10  ;;  %v517_v48 = vsel %vm516_vm3, 1, %v1272_v38  ;;  %v542_v2 = vunpack.c.l.bf16 %v1516_v11  ;;  %v543_v3 = vunpack.c.h.bf16 %v1516_v11 }
  0x8f   : > { %888 = vmatprep.subr.bf16.mxu0 %v1018_v4  ;;  %453 = vmatprep.mubr.bf16.mxu0 %v841_v13  ;;  %v1037_v30 = vld [vmem:[#allocation9 + $0x14] ss:$8 sps:$4 sm:$0xff]   ;;  %v1035_v31 = vld [vmem:[#allocation9 + $0x10] ss:$8 sps:$4 sm:$0xff]   ;;  %v1040_v32 = vld [vmem:[#allocation9 + $0x24] ss:$8 sps:$4 sm:$0xff]  }
  0x90   : > { %v1038_v33 = vld [vmem:[#allocation9 + $0x20] ss:$8 sps:$4 sm:$0xff]   ;;  %v1043_v34 = vld [vmem:[#allocation9 + $0x34] ss:$8 sps:$4 sm:$0xff]   ;;  %v1041_v35 = vld [vmem:[#allocation9 + $0x30] ss:$8 sps:$4 sm:$0xff]  }
  0x91   : > { %v1046_v36 = vld [vmem:[#allocation9 + $0x44] ss:$8 sps:$4 sm:$0xff]   ;;  %v1044_v37 = vld [vmem:[#allocation9 + $0x40] ss:$8 sps:$4 sm:$0xff]   ;;  %v1049_v39 = vld [vmem:[#allocation9 + $0x54] ss:$8 sps:$4 sm:$0xff]  }
  0x92   : > { %889 = vmatpush3.bf16.msra.mxu0 %v1019_v5  ;;  %v1047_v40 = vld [vmem:[#allocation9 + $0x50] ss:$8 sps:$4 sm:$0xff]   ;;  %v1052_v41 = vld [vmem:[#allocation9 + $0x64] ss:$8 sps:$4 sm:$0xff]   ;;  %v1050_v42 = vld [vmem:[#allocation9 + $0x60] ss:$8 sps:$4 sm:$0xff]  }
  0x93   : > { %890 = vmatprep.subr.bf16.mxu0 %v1020_v6  ;;  %v1055_v43 = vld [vmem:[#allocation9 + $0x74] ss:$8 sps:$4 sm:$0xff]   ;;  %v1053_v44 = vld [vmem:[#allocation9 + $0x70] ss:$8 sps:$4 sm:$0xff]   ;;  %v519_v49 = vsel %vm518_vm4, 1, %v1272_v38  ;;  %v521_v50 = vsel %vm520_vm5, 1, %v1272_v38 }
  0x94   : > { %v524_v51 = vsel %vm523_vm6, 1, %v1272_v38  ;;  %vm526_vm7 = vcmp.ge.s32.totalorder %v513_v46, 6  ;;  %vm529_vm8 = vcmp.ge.s32.totalorder %v515_v47, 46  ;;  %v522_v52 = vadd.s32 %v521_v50, %v517_v48  ;;  %s694_s28 = scalar_lea.sflag [#allocation5], %s1498_s30  ;;  %s1170_s18 = scalar_lea.vmem %s1532_s27, 128 }
  0x95   : > { %v525_v53 = vadd.s32 %v524_v51, %v519_v49  ;;  %v527_v54 = vsel %vm526_vm7, 1, %v1272_v38  ;;  %v530_v55 = vsel %vm529_vm8, 1, %v1272_v38  ;;  %p1171_p12 = scmp.ne.s32.totalorder %s1532_s27, %s1170_s18  ;;  %s1273_s22 = smov [#allocation11]  }
  0x96   : > { %891 = vmatpush3.bf16.msra.mxu0 %v1021_v7  ;;  %v528_v56 = vadd.s32 %v527_v54, %v522_v52  ;;  %s1174_s6 = sshll.u32 %s1273_s22, 4  ;;  %s1175_s6 = int_to_ptr.vmem [resolvable:$false] %s1174_s6 }
  0x97   : > { %892 = vmatprep.subr.bf16.mxu0 %v1022_v8  ;;  %v531_v57 = vadd.s32 %v530_v55, %v525_v53  ;;  %p1172_p1 = pnand %p1171_p12, %p1443_p2  ;;  %s1176_s29 = scalar_lea.vmem %s1175_s6, 256 }
  0x98   : > { %p1177_p6 = scmp.lt.s32.totalorder %s1532_s27, %s1175_s6  ;;  %p1178_p8 = scmp.lt.s32.totalorder %s1176_s29, %s1170_s18 }
  0x99   : > { %vm532_vm9 = vcmp.eq.s32.totalorder %v528_v56, %v531_v57  ;;  %p1173_p4 = pneg %p1172_p1 }
  0x9a   : > { %893 = vmatpush3.bf16.msra.mxu0 %v1023_v9  ;;  %p1179_p0 = por %p1178_p8, %p1177_p6 }
  0x9b   : > { %894 = vmatprep.subr.bf16.mxu0 %v1024_v10 }
  0x9c   : > { %p1180_p5 = pnand %p1179_p0, %p1173_p4 }
  0x9e   : > { %895 = vmatpush3.bf16.msra.mxu0 %v1025_v12 }
  0x9f   : > { %896 = vmatprep.subr.bf16.mxu0 %v1026_v14 }
  0xa2   : > { %897 = vmatpush3.bf16.msra.mxu0 %v1027_v15 }
  0xa3   : > { %898 = vmatprep.subr.bf16.mxu0 %v1028_v16 }
  0xa6   : > { %899 = vmatpush3.bf16.msra.mxu0 %v1029_v17 }
  0xa9   : > { %454 = vmatmul.mubr.bf16.vlgmr.msra.gmra.mrb[0].mxu0 %v840_v18 }
 0x17c   : > { %v900_v20 = vpop.f32.mrb[0].mxu0 }
 0x17d   : > { %v901_v21 = vpop.f32.mrb[1].mxu0 }
 0x17e   : > { %v902_v22 = vadd.f32 %v901_v21, %v900_v20  ;;  %v903_v23 = vpop.f32.mrb[2].mxu0 }
 0x17f   : > { %v904_v24 = vpop.f32.mrb[3].mxu0 }
 0x180   : > { %v462_v25 = vpack.c.bf16 %v902_v22, %v902_v22 }
 0x182   : > { %v469_v27 = vsel %vm467_vm1, %v462_v25, 0 }
 0x183   : > { %909 = vmatpush3.bf16.msra.mxu1 %v469_v27 }
 0x184   : > { %641 = vmatprep.subr.bf16.mxu1 %v1034_v26 }
 0x186   : > { %911 = vmatmul.mubr.msk.bf16.vlgmr.msra.gmra.mrb[0].mxu1 %vm463_vm2, %v461_v28 }
 0x187   : > { %642 = vmatpush1.bf16.msra.mxu1 %v1032_v29  ;;  %673 = vmatprep.mubr.bf16.mxu1 %v1272_v38 }
 0x188   : > { %643 = vmatprep.subr.bf16.mxu1 %v1037_v30 }
 0x18b   : > { %644 = vmatpush1.bf16.msra.mxu1 %v1035_v31 }
 0x18c   : > { %645 = vmatprep.subr.bf16.mxu1 %v1040_v32 }
 0x18f   : > { %646 = vmatpush1.bf16.msra.mxu1 %v1038_v33 }
 0x190   : > { %647 = vmatprep.subr.bf16.mxu1 %v1043_v34 }
 0x193   : > { %648 = vmatpush1.bf16.msra.mxu1 %v1041_v35 }
 0x194   : > { %649 = vmatprep.subr.bf16.mxu1 %v1046_v36 }
 0x197   : > { %650 = vmatpush1.bf16.msra.mxu1 %v1044_v37 }
 0x198   : > { %651 = vmatprep.subr.bf16.mxu1 %v1049_v39 }
 0x19b   : > { %652 = vmatpush1.bf16.msra.mxu1 %v1047_v40 }
 0x19c   : > { %653 = vmatprep.subr.bf16.mxu1 %v1052_v41 }
 0x19f   : > { %654 = vmatpush1.bf16.msra.mxu1 %v1050_v42 }
 0x1a0   : > { %655 = vmatprep.subr.bf16.mxu1 %v1055_v43 }
 0x1a3   : > { %656 = vmatpush1.bf16.msra.mxu1 %v1053_v44 }
 0x259   : > { %v505_v58 = vpop.f32.mrb[0].mxu1 }
 0x25a   : > { %v511_v59 = vmax.f32 %v505_v58, 0.0  ;;  %v912_v60 = vpop.f32.mrb[1].mxu1 }
 0x25b   : > { %v508_v61 = vpop.f32.mrb[2].mxu1 }
 0x25c   : > { %v533_v62 = vsel %vm532_vm9, %v511_v59, 0.0  ;;  %v913_v63 = vpop.f32.mrb[3].mxu1 }
 0x25d   : > { %v534_v0 = vpack.c.bf16 %v533_v62, %v533_v62 }
 0x25f   : > { %535 = vst [vmem:[#allocation2] sm:$0xf] %v534_v0 }
 0x266   : > { %v544_v1 = vld [vmem:[#allocation2] sm:$0xf] }
 0x267   : > { %674 = vmatmul.mubr.bf16.vlgmr.msra.gmra.mrb[4].mxu1 %v544_v1 }
 0x33a   : > { %v675_v4 = vpop.f32.mrb[4].mxu1 }
 0x33b   : > { %v682_v5 = vadd.f32 %v675_v4, %v542_v2  ;;  %v677_v6 = vpop.f32.mrb[5].mxu1 }
 0x33c   : > { %v683_v7 = vadd.f32 %v677_v6, %v543_v3  ;;  %v679_v8 = vpop.f32.mrb[6].mxu1 }
 0x33d   : > { %v680_v9 = vpop.f32.mrb[7].mxu1 }
 0x33e   : > { %v882_v10 = vpack.c.bf16 %v683_v7, %v682_v5 }
 0x340   : > { %692 = vst [vmem:[%s277_s25] sm:$0xff] %v882_v10 }
 0x341   : > { %1183 = shalt.err (!%p1180_p5)
}
 0x342   : > { %s1184_s7 = scalar_lea.hbm %s1530_s14, 128  ;;  %s1188_s12 = scalar_lea.hbm %s1583_s4, 256 }
 0x343   : > { %p1185_p10 = scmp.ne.s32.totalorder %s1530_s14, %s1184_s7  ;;  %p1189_p7 = scmp.lt.u32.totalorder %s1530_s14, %s1583_s4 }
 0x344   : > { %p1190_p3 = scmp.lt.u32.totalorder %s1188_s12, %s1184_s7  ;;  %p1192_p12 = scmp.lt.u32.totalorder %s1184_s7, %s1530_s14 }
 0x345   : > { %p1186_p13 = pnand %p1185_p10, %p1443_p2 }
 0x346   : > { %p1191_p11 = por %p1190_p3, %p1189_p7 }
 0x347   : > { %p1187_p9 = pneg %p1186_p13 }
 0x348   : > { %p1193_p1 = por %p1192_p12, %p1191_p11 }
 0x34a   : > { %p1194_p4 = pnand %p1193_p1, %p1187_p9 }
 0x34c   : > { %1197 = shalt.err (!%p1194_p4)
}
 0x34d   : > { %928 = dma.vmem_to_hbm [thread:$0]  (%p1443_p2), %s1532_s27, 128, %s1530_s14, %s694_s28  }
 0x34e PF: > { %s722_s23 = sand.u32 1, %s1240_s15   ;;  %p1601_p6 = scmp.ne.s32.totalorder %s1591_s26, 0 }
 0x34f   : > { %p1602_p8 = scmp.ge.s32.totalorder %s1260_s20, 2  ;;  %s723_s25 = scalar_lea.sflag [#allocation5], %s722_s23 }
 0x351   : > { %p945_p0 = pnand %p1602_p8, %p1601_p6 }
 0x353   : > { %1235 = dma.done.wait (!%p945_p0), %s723_s25, 128  }
 0x354   : > { %1237 = vsyncadd (!%p945_p0), %s723_s25, 4294967168  ;;  %s22_s20 = sadd.s32 1, %s1260_s20   ;;  %s1603_s15 = smov %s1244_s16 }
 0x355   : > { %p19_p5 = scmp.ge.s32.totalorder %s22_s20, 4   ;;  %s1604_s16 = smov %s1248_s17 }
 0x356   : > { %s1605_s17 = smov %s1455_s21  ;;  %s1606_s18 = smov %s1256_s19 }
 0x357   : > { %s1607_s19 = smov %s1609_s10  ;;  %21 = sbr.rel (!%p19_p5) target bundleno = 8 (0x8), region = 99 }
 0x35e   :  { %728 = vsyncpa [#allocation4], 1 }
 0x35f   :  { %730 = vsyncpa [#allocation4 + $0x1], 1 }
 0x360   :  { %731 = vsyncpa [#allocation7], 1 }
 0x361   :  { %732 = vsyncpa [#allocation10], 1 }
 0x362   :  { %733 = vsyncpa [#allocation5], 1 }
 0x363   :  { %735 = vsyncpa [#allocation5 + $0x1], 1 }

// kernel: tpu_custom_call.1
= control target key start
LH: loop header
LB: loop body
LE: loop exit
PB: predicated region body
PF: predicated region fallthrough
CT: control target
= control target key end

     0   :  { %9 = vsyncpa [#allocation4], 0  ;;  %s1579_s0 = inlined_call_operand.hbm [shape: bf16[2,8,256], index: 0, kind: input, shape index: {}]   ;;  %s1580_s1 = inlined_call_operand.hbm [shape: bf16[8,8], index: 1, kind: input, shape index: {}]   ;;  %s1581_s2 = inlined_call_operand.hbm [shape: bf16[256,128], index: 2, kind: input, shape index: {}]   ;;  %s1582_s3 = inlined_call_operand.hbm [shape: bf16[128,256], index: 3, kind: input, shape index: {}]   ;;  %s1583_s4 = inlined_call_operand.hbm [shape: bf16[2,8,256], index: 4, kind: output, shape index: {}]  }
   0x1   :  { %11 = vsyncpa [#allocation4 + $0x1], 0 }
   0x2   :  { %12 = vsyncpa [#allocation7], 0 }
   0x3   :  { %13 = vsyncpa [#allocation10], 0 }
   0x4   :  { %14 = vsyncpa [#allocation5], 0 }
   0x5   :  { %16 = vsyncpa [#allocation5 + $0x1], 0  ;;  %s1299_s15 = smov 0   ;;  %s1301_s16 = smov 0  }
   0x6   :  { %s1303_s17 = smov 0   ;;  %s1305_s18 = smov 0  }
   0x7   :  { %s1307_s19 = smov 0   ;;  %s1309_s20 = smov 0  }
   0x8 LB: > { %s824_s21 = sadd.s32 4294967295, %s1260_s20   ;;  %s825_s22 = sadd.s32 4294967294, %s1260_s20   ;;  %s1260_s20 = sphi %s1309_s20, %s22_s20   ;;  %s1256_s19 = sphi %s1307_s19, %s1607_s19   ;;  %s1252_s18 = sphi %s1305_s18, %s1606_s18   ;;  %s1248_s17 = sphi %s1303_s17, %s1605_s17   ;;  %s1244_s16 = sphi %s1301_s16, %s1604_s16   ;;  %s1240_s15 = sphi %s1299_s15, %s1603_s15  }
   0x9   : > { %p54_p0 = scmp.ne.s32.totalorder %s1244_s16, %s1240_s15  ;;  %p1333_p1 = scmp.eq.s32.totalorder %s824_s21, 0 }
   0xa   : > { %p1337_p2 = scmp.eq.s32.totalorder %s824_s21, 1  ;;  %p154_p3 = scmp.eq.s32.totalorder %s825_s22, 1 }
   0xb   : > { %s1588_s23 = scalar_select %p1333_p1, 1, 0 }
   0xc   : > { %s1589_s24 = scalar_select %p1337_p2, 1, 0 }
   0xd   : > { %p1343_p4 = por %p1333_p1, %p54_p0  ;;  %p826_p5 = scmp.ge.s32.totalorder %s1260_s20, 1 }
   0xe   : > { %p1348_p6 = por %p154_p3, %p54_p0  ;;  %p161_p7 = scmp.lt.s32.totalorder %s1260_s20, 3 }
   0xf   : > { %s1590_s25 = scalar_select %p1343_p4, 1, 0 }
  0x10   : > { %s1591_s26 = scalar_select %p1348_p6, 1, 0 }
  0x11   : > { %p1353_p8 = pnand %p826_p5, %p161_p7  ;;  %s1262_s28 = smov [#allocation6]  }
  0x12   : > { %s174_s29 = sshll.u32 %s1262_s28, 4  ;;  %s1263_s30 = smov [#allocation8]   ;;  %s175_s29 = int_to_ptr.vmem [resolvable:$true] %s174_s29 }
  0x13   : > { %s1592_s27 = scalar_select %p1353_p8, 1, 0 }
  0x14   : > { %p930_p10 = pneg %p1353_p8  ;;  %s184_s5 = sshll.u32 %s1263_s30, 4  ;;  %s1366_s5 = int_to_ptr.vmem [resolvable:$true] %s184_s5 }
  0x15   : > { %s1264_s7 = smov [#allocation9]   ;;  %s1056_s11 = scalar_lea.hbm %s1580_s1, 64 }
  0x16   : > { %p1362_p11 = pnand %p930_p10, %p1333_p1  ;;  %s1368_s8 = sshll.u32 %s1264_s7, 4  ;;  %s201_s8 = int_to_ptr.vmem [resolvable:$true] %s1368_s8 }
  0x17   : > { %p1057_p12 = scmp.ne.s32.totalorder %s1580_s1, %s1056_s11  ;;  %p1063_p5 = scmp.lt.u32.totalorder %s1056_s11, %s1580_s1 }
  0x18   : > { %p1378_p13 = pneg %p1362_p11 }
  0x1a   : > { %p1059_p0 = pnand %p1378_p13, %p1057_p12 }
  0x1c   : > { %p1060_p3 = pneg %p1059_p0 }
  0x1e   : > { %p1065_p7 = pnand %p1063_p5, %p1060_p3 }
  0x20   : > { %1068 = shalt.err (!%p1065_p7)
}
  0x21   : > { %s1069_s28 = scalar_lea.vmem %s175_s29, 64  ;;  %p1077_p1 = scmp.lt.s32.totalorder %s175_s29, %s175_s29 }
  0x22   : > { %p1070_p10 = scmp.ne.s32.totalorder %s175_s29, %s1069_s28  ;;  %p1078_p4 = scmp.lt.s32.totalorder %s1069_s28, %s1069_s28 }
  0x24   : > { %p1072_p9 = pnand %p1070_p10, %p1378_p13  ;;  %p1079_p8 = por %p1078_p4, %p1077_p1 }
  0x26   : > { %p1073_p6 = pneg %p1072_p9 }
  0x28   : > { %p1080_p2 = pnand %p1079_p8, %p1073_p6 }
  0x2a   : > { %1083 = shalt.err (!%p1080_p2)
}
  0x2b   : > { %933 = dma.hbm_to_vmem [thread:$0]  (!%p1362_p11), %s1580_s1, 64, %s175_s29, [#allocation7]  }
  0x2c   : > { %s1084_s11 = scalar_lea.hbm %s1581_s2, 2048 }
  0x2d   : > { %p1085_p9 = scmp.ne.s32.totalorder %s1581_s2, %s1084_s11  ;;  %p1091_p2 = scmp.lt.u32.totalorder %s1084_s11, %s1581_s2 }
  0x2f   : > { %p1087_p12 = pnand %p1085_p9, %p1378_p13 }
  0x31   : > { %p1088_p1 = pneg %p1087_p12 }
  0x33   : > { %p1093_p4 = pnand %p1091_p2, %p1088_p1 }
  0x35   : > { %1096 = shalt.err (!%p1093_p4)
}
  0x36   : > { %s1097_s29 = scalar_lea.vmem %s1366_s5, 2048  ;;  %p1105_p3 = scmp.lt.s32.totalorder %s1366_s5, %s1366_s5 }
  0x37   : > { %p1098_p6 = scmp.ne.s32.totalorder %s1366_s5, %s1097_s29  ;;  %p1106_p5 = scmp.lt.s32.totalorder %s1097_s29, %s1097_s29 }
  0x39   : > { %p1100_p8 = pnand %p1098_p6, %p1378_p13  ;;  %p1107_p7 = por %p1106_p5, %p1105_p3 }
  0x3b   : > { %p1101_p0 = pneg %p1100_p8 }
  0x3d   : > { %p1108_p10 = pnand %p1107_p7, %p1101_p0 }
  0x3f   : > { %1111 = shalt.err (!%p1108_p10)
}
  0x40   : > { %s1265_s28 = smov 64   ;;  %s1266_s30 = smov 4  }
  0x41   : > { %936 = dma.hbm_to_vmem [thread:$0]  (!%p1362_p11), %s1581_s2, 2048, %s1366_s5, [#allocation7], %s1265_s28, %s1265_s28, %s1266_s30  }
  0x42   : > { %s1112_s12 = scalar_lea.hbm %s1582_s3, 2048 }
  0x43   : > { %p1113_p9 = scmp.ne.s32.totalorder %s1582_s3, %s1112_s12  ;;  %p1119_p2 = scmp.lt.u32.totalorder %s1112_s12, %s1582_s3 }
  0x45   : > { %p1115_p12 = pnand %p1113_p9, %p1378_p13 }
  0x47   : > { %p1116_p1 = pneg %p1115_p12 }
  0x49   : > { %p1121_p4 = pnand %p1119_p2, %p1116_p1 }
  0x4b   : > { %1124 = shalt.err (!%p1121_p4)
}
  0x4c   : > { %s1125_s7 = scalar_lea.vmem %s201_s8, 2048  ;;  %p1133_p3 = scmp.lt.s32.totalorder %s201_s8, %s201_s8 }
  0x4d   : > { %p1126_p6 = scmp.ne.s32.totalorder %s201_s8, %s1125_s7  ;;  %p1134_p5 = scmp.lt.s32.totalorder %s1125_s7, %s1125_s7 }
  0x4f   : > { %p1128_p8 = pnand %p1126_p6, %p1378_p13  ;;  %p1135_p7 = por %p1134_p5, %p1133_p3 }
  0x51   : > { %p1129_p0 = pneg %p1128_p8 }
  0x53   : > { %p1136_p10 = pnand %p1135_p7, %p1129_p0 }
  0x55   : > { %1139 = shalt.err (!%p1136_p10)
}
  0x56   : > { %s1267_s5 = smov 128   ;;  %s1268_s14 = smov 8  }
  0x57   : > { %939 = dma.hbm_to_vmem [thread:$0]  (!%p1362_p11), %s1582_s3, 2048, %s201_s8, [#allocation10], %s1267_s5, %s1267_s5, %s1268_s14  }
  0x58   : > { %s41_s9 = sadd.s32 1, %s1248_s17  ;;  %s34_s10 = sadd.s32 1, %s1256_s19 }
  0x59   : > { %p48_p13 = scmp.ne.s32.totalorder %s1248_s17, %s1244_s16  ;;  %p36_p9 = scmp.ge.s32.totalorder %s34_s10, 2 }
  0x5a   : > { %p49_p12 = scmp.eq.s32.totalorder %s1260_s20, 0  ;;  %p1595_p1 = scmp.ne.s32.totalorder %s1589_s24, 0 }
  0x5b   : > { %p951_p4 = scmp.lt.s32.totalorder %s1260_s20, 2  ;;  %s1609_s10 = smov (%p36_p9, %s34_s10), 0 }
  0x5c   : > { %p1443_p2 = por %p1595_p1, %p48_p13  ;;  %p50_p6 = por %p49_p12, %p48_p13 }
  0x5d   : > { %s214_s6 = sand.u32 1, %s1248_s17   ;;  %s38_s12 = ssub.s32 %s1256_s19, %s1609_s10 }
  0x5e   : > { %p39_p8 = scmp.eq.s32.totalorder %s38_s12, 0  ;;  %s831_s8 = sshll.u32 %s214_s6, 3 }
  0x5f   : > { %s881_s13 = sshll.u32 %s1256_s19, 7  ;;  %s218_s7 = scalar_lea.vmem [#allocation3], %s831_s8 }
  0x60   : > { %s1455_s21 = scalar_select %p39_p8, %s1248_s17, %s41_s9  }
  0x61   : > { %s1460_s24 = scalar_lea.hbm %s1579_s0, %s881_s13  ;;  %s226_s5 = sshll.u32 %s218_s7, 4  ;;  %s1462_s5 = int_to_ptr.vmem [resolvable:$true] %s226_s5 }
  0x62   : > { %p1466_p11 = pnand %p951_p4, %p50_p6  ;;  %s215_s28 = scalar_lea.sflag [#allocation4], %s214_s6 }
  0x63   : > { %s1140_s30 = scalar_lea.hbm %s1460_s24, 128  ;;  %s1145_s8 = scalar_lea.hbm %s1579_s0, 256 }
  0x64   : > { %p1141_p0 = scmp.ne.s32.totalorder %s1460_s24, %s1140_s30  ;;  %p1142_p3 = pneg %p1466_p11 }
  0x65   : > { %p1146_p10 = scmp.lt.u32.totalorder %s1460_s24, %s1579_s0  ;;  %p1147_p13 = scmp.lt.u32.totalorder %s1145_s8, %s1140_s30 }
  0x66   : > { %p1143_p5 = pnand %p1142_p3, %p1141_p0  ;;  %p1149_p12 = scmp.lt.u32.totalorder %s1140_s30, %s1460_s24 }
  0x67   : > { %p1148_p9 = por %p1147_p13, %p1146_p10 }
  0x68   : > { %p1144_p7 = pneg %p1143_p5 }
  0x69   : > { %p1150_p1 = por %p1149_p12, %p1148_p9 }
  0x6b   : > { %p1151_p4 = pnand %p1150_p1, %p1144_p7 }
  0x6d   : > { %1154 = shalt.err (!%p1151_p4)
}
  0x6e   : > { %s1155_s6 = scalar_lea.vmem %s1462_s5, 128  ;;  %s1269_s29 = smov [#allocation3]  }
  0x6f   : > { %p1156_p6 = scmp.ne.s32.totalorder %s1462_s5, %s1155_s6  ;;  %s1160_s7 = sshll.u32 %s1269_s29, 4  ;;  %s1161_s7 = int_to_ptr.vmem [resolvable:$false] %s1160_s7 }
  0x70   : > { %s1162_s9 = scalar_lea.vmem %s1161_s7, 256  ;;  %p1163_p5 = scmp.lt.s32.totalorder %s1462_s5, %s1161_s7 }
  0x71   : > { %p1158_p8 = pnand %p1156_p6, %p1142_p3  ;;  %p1164_p10 = scmp.lt.s32.totalorder %s1162_s9, %s1155_s6 }
  0x73   : > { %p1159_p0 = pneg %p1158_p8  ;;  %p1165_p13 = por %p1164_p10, %p1163_p5 }
  0x75   : > { %p1166_p9 = pnand %p1165_p13, %p1159_p0 }
  0x77   : > { %1169 = shalt.err (!%p1166_p9)
}
  0x78   : > { %943 = dma.hbm_to_vmem [thread:$0]  (!%p1466_p11), %s1460_s24, 128, %s1462_s5, %s215_s28  }
  0x79   : > { %p1598_p7 = scmp.ne.s32.totalorder %s1592_s27, 0 }
  0x7a   : > { %s1498_s30 = sand.u32 (!%p1598_p7), 1, %s1244_s16   ;;  %p1599_p3 = scmp.ne.s32.totalorder (!%p1598_p7), %s1590_s25, 0 }
  0x7b   : > { %235 = sbr.rel (%p1598_p7) target bundleno = 846 (0x34e), region = 36  ;;  %s835_s12 = sshll.u32 (!%p1598_p7), %s1498_s30, 3 }
  0x7c   : > { %s238_s8 = scalar_lea.sflag (!%p1598_p7), [#allocation4], %s1498_s30  ;;  %s241_s13 = scalar_lea.vmem (!%p1598_p7), [#allocation3], %s835_s12 }
  0x82   : > { %1223 = dma.done.wait (%p1599_p3), %s238_s8, 128  }
  0x83   : > { %1225 = vsyncadd (%p1599_p3), %s238_s8, 4294967168  ;;  %p1600_p11 = scmp.ne.s32.totalorder %s1588_s23, 0 }
  0x85   : > { %1227 = dma.done.wait (%p1600_p11), [#allocation7], 2112  }
  0x86   : > { %1229 = vsyncadd (%p1600_p11), [#allocation7], 4294965184 }
  0x87   : > { %1231 = dma.done.wait (%p1600_p11), [#allocation10], 2048  }
  0x88   : > { %1233 = vsyncadd (%p1600_p11), [#allocation10], 4294965248  ;;  %v1014_v0 = vld [vmem:[#allocation8 + $0x40] sm:$0xff]   ;;  %v1016_v2 = vld [vmem:[#allocation8 + $0x48] sm:$0xff]   ;;  %v1270_v19 = vmov 0.0   ;;  %vm1271_vm0 = vmmov 0   ;;  %v512_v45 = vlaneseq }
  0x89   : > { %v1015_v1 = vld [vmem:[#allocation8] sm:$0xff]   ;;  %884 = vmatprep.subr.bf16.mxu0 %v1014_v0  ;;  %v1017_v3 = vld [vmem:[#allocation8 + $0x8] sm:$0xff]   ;;  %v1018_v4 = vld [vmem:[#allocation8 + $0x50] sm:$0xff]   ;;  %908 = vmatprep.subr.bf16.mxu1 %v1270_v19  ;;  %vm467_vm1 = vcmask 1043456   ;;  %vm463_vm2 = vcmask 64512   ;;  %v1272_v38 = vmov 0  }
  0x8a   : > { %885 = vmatpush3.bf16.msra.mxu0 %v1015_v1  ;;  %v1019_v5 = vld [vmem:[#allocation8 + $0x10] sm:$0xff]   ;;  %v1020_v6 = vld [vmem:[#allocation8 + $0x58] sm:$0xff]   ;;  %v1022_v8 = vld [vmem:[#allocation8 + $0x60] sm:$0xff]   ;;  %910 = vmatprep.mubr.msk.bf16.mxu1 %vm1271_vm0, %v1270_v19  ;;  %v513_v46 = vshrl.u32 %v512_v45, 7  ;;  %v515_v47 = vand.u32 127, %v512_v45  ;;  %s883_s23 = sshll.u32 %s1252_s18, 7 }
  0x8b   : > { %886 = vmatprep.subr.bf16.mxu0 %v1016_v2  ;;  %v1021_v7 = vld [vmem:[#allocation8 + $0x18] sm:$0xff]   ;;  %v1023_v9 = vld [vmem:[#allocation8 + $0x20] sm:$0xff]   ;;  %v1024_v10 = vld [vmem:[#allocation8 + $0x68] sm:$0xff]   ;;  %s277_s25 = scalar_lea.vmem [#allocation11], %s835_s12  ;;  %s1530_s14 = scalar_lea.hbm %s1583_s4, %s883_s23 }
  0x8c   : > { %v1516_v11 = vld [vmem:[%s241_s13] sm:$0xff]  ;;  %v461_v28 = vld [vmem:[#allocation6] sm:$0xf]  ;;  %v1032_v29 = vld [vmem:[#allocation9] ss:$8 sps:$4 sm:$0xff]   ;;  %vm516_vm3 = vcmp.ge.s32.totalorder %v513_v46, 2 }
  0x8d   : > { %v1025_v12 = vld [vmem:[#allocation8 + $0x28] sm:$0xff]   ;;  %v841_v13 = vcombine.high %v1516_v11, %v1516_v11  ;;  %v1026_v14 = vld [vmem:[#allocation8 + $0x70] sm:$0xff]   ;;  %v1028_v16 = vld [vmem:[#allocation8 + $0x78] sm:$0xff]   ;;  %v840_v18 = vcombine.low %v1516_v11, %v1516_v11  ;;  %vm518_vm4 = vcmp.ge.s32.totalorder %v515_v47, 1  ;;  %vm520_vm5 = vcmp.ge.s32.totalorder %v513_v46, 4  ;;  %s710_s27 = sshll.u32 %s277_s25, 4  ;;  %s1532_s27 = int_to_ptr.vmem [resolvable:$true] %s710_s27 }
  0x8e   : > { %887 = vmatpush3.bf16.msra.mxu0 %v1017_v3  ;;  %v1027_v15 = vld [vmem:[#allocation8 + $0x30] sm:$0xff]   ;;  %v1029_v17 = vld [vmem:[#allocation8 + $0x38] sm:$0xff]   ;;  %v1034_v26 = vld [vmem:[#allocation9 + $0x4] ss:$8 sps:$4 sm:$0xff]   ;;  %vm523_vm6 = vcmp.ge.s32.totalorder %v515_v47, 10  ;;  %v517_v48 = vsel %vm516_vm3, 1, %v1272_v38  ;;  %v542_v2 = vunpack.c.l.bf16 %v1516_v11  ;;  %v543_v3 = vunpack.c.h.bf16 %v1516_v11 }
  0x8f   : > { %888 = vmatprep.subr.bf16.mxu0 %v1018_v4  ;;  %453 = vmatprep.mubr.bf16.mxu0 %v841_v13  ;;  %v1037_v30 = vld [vmem:[#allocation9 + $0x14] ss:$8 sps:$4 sm:$0xff]   ;;  %v1035_v31 = vld [vmem:[#allocation9 + $0x10] ss:$8 sps:$4 sm:$0xff]   ;;  %v1040_v32 = vld [vmem:[#allocation9 + $0x24] ss:$8 sps:$4 sm:$0xff]  }
  0x90   : > { %v1038_v33 = vld [vmem:[#allocation9 + $0x20] ss:$8 sps:$4 sm:$0xff]   ;;  %v1043_v34 = vld [vmem:[#allocation9 + $0x34] ss:$8 sps:$4 sm:$0xff]   ;;  %v1041_v35 = vld [vmem:[#allocation9 + $0x30] ss:$8 sps:$4 sm:$0xff]  }
  0x91   : > { %v1046_v36 = vld [vmem:[#allocation9 + $0x44] ss:$8 sps:$4 sm:$0xff]   ;;  %v1044_v37 = vld [vmem:[#allocation9 + $0x40] ss:$8 sps:$4 sm:$0xff]   ;;  %v1049_v39 = vld [vmem:[#allocation9 + $0x54] ss:$8 sps:$4 sm:$0xff]  }
  0x92   : > { %889 = vmatpush3.bf16.msra.mxu0 %v1019_v5  ;;  %v1047_v40 = vld [vmem:[#allocation9 + $0x50] ss:$8 sps:$4 sm:$0xff]   ;;  %v1052_v41 = vld [vmem:[#allocation9 + $0x64] ss:$8 sps:$4 sm:$0xff]   ;;  %v1050_v42 = vld [vmem:[#allocation9 + $0x60] ss:$8 sps:$4 sm:$0xff]  }
  0x93   : > { %890 = vmatprep.subr.bf16.mxu0 %v1020_v6  ;;  %v1055_v43 = vld [vmem:[#allocation9 + $0x74] ss:$8 sps:$4 sm:$0xff]   ;;  %v1053_v44 = vld [vmem:[#allocation9 + $0x70] ss:$8 sps:$4 sm:$0xff]   ;;  %v519_v49 = vsel %vm518_vm4, 1, %v1272_v38  ;;  %v521_v50 = vsel %vm520_vm5, 1, %v1272_v38 }
  0x94   : > { %v524_v51 = vsel %vm523_vm6, 1, %v1272_v38  ;;  %vm526_vm7 = vcmp.ge.s32.totalorder %v513_v46, 6  ;;  %vm529_vm8 = vcmp.ge.s32.totalorder %v515_v47, 46  ;;  %v522_v52 = vadd.s32 %v521_v50, %v517_v48  ;;  %s694_s28 = scalar_lea.sflag [#allocation5], %s1498_s30  ;;  %s1170_s18 = scalar_lea.vmem %s1532_s27, 128 }
  0x95   : > { %v525_v53 = vadd.s32 %v524_v51, %v519_v49  ;;  %v527_v54 = vsel %vm526_vm7, 1, %v1272_v38  ;;  %v530_v55 = vsel %vm529_vm8, 1, %v1272_v38  ;;  %p1171_p12 = scmp.ne.s32.totalorder %s1532_s27, %s1170_s18  ;;  %s1273_s22 = smov [#allocation11]  }
  0x96   : > { %891 = vmatpush3.bf16.msra.mxu0 %v1021_v7  ;;  %v528_v56 = vadd.s32 %v527_v54, %v522_v52  ;;  %s1174_s6 = sshll.u32 %s1273_s22, 4  ;;  %s1175_s6 = int_to_ptr.vmem [resolvable:$false] %s1174_s6 }
  0x97   : > { %892 = vmatprep.subr.bf16.mxu0 %v1022_v8  ;;  %v531_v57 = vadd.s32 %v530_v55, %v525_v53  ;;  %p1172_p1 = pnand %p1171_p12, %p1443_p2  ;;  %s1176_s29 = scalar_lea.vmem %s1175_s6, 256 }
  0x98   : > { %p1177_p6 = scmp.lt.s32.totalorder %s1532_s27, %s1175_s6  ;;  %p1178_p8 = scmp.lt.s32.totalorder %s1176_s29, %s1170_s18 }
  0x99   : > { %vm532_vm9 = vcmp.eq.s32.totalorder %v528_v56, %v531_v57  ;;  %p1173_p4 = pneg %p1172_p1 }
  0x9a   : > { %893 = vmatpush3.bf16.msra.mxu0 %v1023_v9  ;;  %p1179_p0 = por %p1178_p8, %p1177_p6 }
  0x9b   : > { %894 = vmatprep.subr.bf16.mxu0 %v1024_v10 }
  0x9c   : > { %p1180_p5 = pnand %p1179_p0, %p1173_p4 }
  0x9e   : > { %895 = vmatpush3.bf16.msra.mxu0 %v1025_v12 }
  0x9f   : > { %896 = vmatprep.subr.bf16.mxu0 %v1026_v14 }
  0xa2   : > { %897 = vmatpush3.bf16.msra.mxu0 %v1027_v15 }
  0xa3   : > { %898 = vmatprep.subr.bf16.mxu0 %v1028_v16 }
  0xa6   : > { %899 = vmatpush3.bf16.msra.mxu0 %v1029_v17 }
  0xa9   : > { %454 = vmatmul.mubr.bf16.vlgmr.msra.gmra.mrb[0].mxu0 %v840_v18 }
 0x17c   : > { %v900_v20 = vpop.f32.mrb[0].mxu0 }
 0x17d   : > { %v901_v21 = vpop.f32.mrb[1].mxu0 }
 0x17e   : > { %v902_v22 = vadd.f32 %v901_v21, %v900_v20  ;;  %v903_v23 = vpop.f32.mrb[2].mxu0 }
 0x17f   : > { %v904_v24 = vpop.f32.mrb[3].mxu0 }
 0x180   : > { %v462_v25 = vpack.c.bf16 %v902_v22, %v902_v22 }
 0x182   : > { %v469_v27 = vsel %vm467_vm1, %v462_v25, 0 }
 0x183   : > { %909 = vmatpush3.bf16.msra.mxu1 %v469_v27 }
 0x184   : > { %641 = vmatprep.subr.bf16.mxu1 %v1034_v26 }
 0x186   : > { %911 = vmatmul.mubr.msk.bf16.vlgmr.msra.gmra.mrb[0].mxu1 %vm463_vm2, %v461_v28 }
 0x187   : > { %642 = vmatpush1.bf16.msra.mxu1 %v1032_v29  ;;  %673 = vmatprep.mubr.bf16.mxu1 %v1272_v38 }
 0x188   : > { %643 = vmatprep.subr.bf16.mxu1 %v1037_v30 }
 0x18b   : > { %644 = vmatpush1.bf16.msra.mxu1 %v1035_v31 }
 0x18c   : > { %645 = vmatprep.subr.bf16.mxu1 %v1040_v32 }
 0x18f   : > { %646 = vmatpush1.bf16.msra.mxu1 %v1038_v33 }
 0x190   : > { %647 = vmatprep.subr.bf16.mxu1 %v1043_v34 }
 0x193   : > { %648 = vmatpush1.bf16.msra.mxu1 %v1041_v35 }
 0x194   : > { %649 = vmatprep.subr.bf16.mxu1 %v1046_v36 }
 0x197   : > { %650 = vmatpush1.bf16.msra.mxu1 %v1044_v37 }
 0x198   : > { %651 = vmatprep.subr.bf16.mxu1 %v1049_v39 }
 0x19b   : > { %652 = vmatpush1.bf16.msra.mxu1 %v1047_v40 }
 0x19c   : > { %653 = vmatprep.subr.bf16.mxu1 %v1052_v41 }
 0x19f   : > { %654 = vmatpush1.bf16.msra.mxu1 %v1050_v42 }
 0x1a0   : > { %655 = vmatprep.subr.bf16.mxu1 %v1055_v43 }
 0x1a3   : > { %656 = vmatpush1.bf16.msra.mxu1 %v1053_v44 }
 0x259   : > { %v505_v58 = vpop.f32.mrb[0].mxu1 }
 0x25a   : > { %v511_v59 = vmax.f32 %v505_v58, 0.0  ;;  %v912_v60 = vpop.f32.mrb[1].mxu1 }
 0x25b   : > { %v508_v61 = vpop.f32.mrb[2].mxu1 }
 0x25c   : > { %v533_v62 = vsel %vm532_vm9, %v511_v59, 0.0  ;;  %v913_v63 = vpop.f32.mrb[3].mxu1 }
 0x25d   : > { %v534_v0 = vpack.c.bf16 %v533_v62, %v533_v62 }
 0x25f   : > { %535 = vst [vmem:[#allocation2] sm:$0xf] %v534_v0 }
 0x266   : > { %v544_v1 = vld [vmem:[#allocation2] sm:$0xf] }
 0x267   : > { %674 = vmatmul.mubr.bf16.vlgmr.msra.gmra.mrb[4].mxu1 %v544_v1 }
 0x33a   : > { %v675_v4 = vpop.f32.mrb[4].mxu1 }
 0x33b   : > { %v682_v5 = vadd.f32 %v675_v4, %v542_v2  ;;  %v677_v6 = vpop.f32.mrb[5].mxu1 }
 0x33c   : > { %v683_v7 = vadd.f32 %v677_v6, %v543_v3  ;;  %v679_v8 = vpop.f32.mrb[6].mxu1 }
 0x33d   : > { %v680_v9 = vpop.f32.mrb[7].mxu1 }
 0x33e   : > { %v882_v10 = vpack.c.bf16 %v683_v7, %v682_v5 }
 0x340   : > { %692 = vst [vmem:[%s277_s25] sm:$0xff] %v882_v10 }
 0x341   : > { %1183 = shalt.err (!%p1180_p5)
}
 0x342   : > { %s1184_s7 = scalar_lea.hbm %s1530_s14, 128  ;;  %s1188_s12 = scalar_lea.hbm %s1583_s4, 256 }
 0x343   : > { %p1185_p10 = scmp.ne.s32.totalorder %s1530_s14, %s1184_s7  ;;  %p1189_p7 = scmp.lt.u32.totalorder %s1530_s14, %s1583_s4 }
 0x344   : > { %p1190_p3 = scmp.lt.u32.totalorder %s1188_s12, %s1184_s7  ;;  %p1192_p12 = scmp.lt.u32.totalorder %s1184_s7, %s1530_s14 }
 0x345   : > { %p1186_p13 = pnand %p1185_p10, %p1443_p2 }
 0x346   : > { %p1191_p11 = por %p1190_p3, %p1189_p7 }
 0x347   : > { %p1187_p9 = pneg %p1186_p13 }
 0x348   : > { %p1193_p1 = por %p1192_p12, %p1191_p11 }
 0x34a   : > { %p1194_p4 = pnand %p1193_p1, %p1187_p9 }
 0x34c   : > { %1197 = shalt.err (!%p1194_p4)
}
 0x34d   : > { %928 = dma.vmem_to_hbm [thread:$0]  (%p1443_p2), %s1532_s27, 128, %s1530_s14, %s694_s28  }
 0x34e PF: > { %s722_s23 = sand.u32 1, %s1240_s15   ;;  %p1601_p6 = scmp.ne.s32.totalorder %s1591_s26, 0 }
 0x34f   : > { %p1602_p8 = scmp.ge.s32.totalorder %s1260_s20, 2  ;;  %s723_s25 = scalar_lea.sflag [#allocation5], %s722_s23 }
 0x351   : > { %p945_p0 = pnand %p1602_p8, %p1601_p6 }
 0x353   : > { %1235 = dma.done.wait (!%p945_p0), %s723_s25, 128  }
 0x354   : > { %1237 = vsyncadd (!%p945_p0), %s723_s25, 4294967168  ;;  %s22_s20 = sadd.s32 1, %s1260_s20   ;;  %s1603_s15 = smov %s1244_s16 }
 0x355   : > { %p19_p5 = scmp.ge.s32.totalorder %s22_s20, 4   ;;  %s1604_s16 = smov %s1248_s17 }
 0x356   : > { %s1605_s17 = smov %s1455_s21  ;;  %s1606_s18 = smov %s1256_s19 }
 0x357   : > { %s1607_s19 = smov %s1609_s10  ;;  %21 = sbr.rel (!%p19_p5) target bundleno = 8 (0x8), region = 99 }
 0x35e   :  { %728 = vsyncpa [#allocation4], 1 }
 0x35f   :  { %730 = vsyncpa [#allocation4 + $0x1], 1 }
 0x360   :  { %731 = vsyncpa [#allocation7], 1 }
 0x361   :  { %732 = vsyncpa [#allocation10], 1 }
 0x362   :  { %733 = vsyncpa [#allocation5], 1 }
 0x363   :  { %735 = vsyncpa [#allocation5 + $0x1], 1 }

</bundles_post_ra>
